<compile_context>
chip_gen: v7x
topology: tpu7x:2x2x1
jax: 0.10.0
libtpu: 0.0.40
codegen_flags: <defaults>
</compile_context>

<pallas_src>
import functools

import jax
import jax.numpy as jnp
from jax.experimental import pallas as pl
from jax.experimental.pallas import tpu as pltpu


_MAX_FOLD_COLS = 128  # max 128-lane columns folded with an unrolled VPU add chain


def _lane_sum_f32(xf):
    """Sum a (C, L) f32 value over the lane axis -> (C, 1).

    Folds 128-lane columns with plain VPU adds first (static slices at lane
    multiples of 128 are vreg-column selects, no relayout), so only a single
    cross-lane (XLU) reduce of one 128-lane column remains at the end.
    """
    L = xf.shape[1]
    ncol = L // 128
    if L % 128 == 0 and 1 < ncol <= _MAX_FOLD_COLS:
        acc = xf[:, :128]
        for k in range(1, ncol):
            acc = acc + xf[:, k * 128:(k + 1) * 128]
        return jnp.sum(acc, axis=1, keepdims=True)
    return jnp.sum(xf, axis=1, keepdims=True)


def _stable_sigmoid(y):
    """Numerically-stable sigmoid (no overflow for large |y|), exact divide."""
    pos = y >= 0.0
    z = jnp.exp(jnp.where(pos, -y, y))
    r = 1.0 / (1.0 + z)
    return jnp.where(pos, r, z * r)


# --------------------------------------------------------------------------
# Fused single-pass kernel (preferred): whole (C, HW) image slab resident in
# VMEM -> pooled mean -> folded conv/BN matvec -> sigmoid -> x * att.
# HBM traffic: 1 read + 1 write of x.
# --------------------------------------------------------------------------
def arm_fused_kernel(inv_hw, x_ref, w_ref, b_ref, o_ref):
    xf = x_ref[0].astype(jnp.float32)                      # (C, HW)
    mean = _lane_sum_f32(xf) * inv_hw                      # (C, 1)
    # Folded 1x1 conv + eval-mode BN: y = (scale*W) @ mean + shift'
    y = jnp.dot(w_ref[...], mean,
                preferred_element_type=jnp.float32) + b_ref[...]   # (C, 1)
    att = _stable_sigmoid(y)                               # (C, 1) f32
    # Re-weight while the slab is still in VMEM (native dtype multiply).
    o_ref[0] = x_ref[0] * att.astype(o_ref.dtype)


# --------------------------------------------------------------------------
# Fallback pass 1 (very large HW): tiled global-average-pool with a lane-wide
# (C, 128) f32 accumulator (pure VPU per tile; one cross-lane reduce per image)
# + folded conv/BN matvec + sigmoid -> attention vector (N, C, 1).
# --------------------------------------------------------------------------
def arm_att_kernel(inv_hw, x_ref, w_ref, b_ref, att_ref, acc_ref):
    t = pl.program_id(1)

    @pl.when(t == 0)
    def _():
        acc_ref[...] = jnp.zeros_like(acc_ref)

    xf = x_ref[0].astype(jnp.float32)                      # (C, t_hw)
    ncol = xf.shape[1] // 128                              # t_hw % 128 == 0
    p = xf[:, :128]
    for k in range(1, ncol):
        p = p + xf[:, k * 128:(k + 1) * 128]
    acc_ref[...] += p                                      # (C, 128), VPU only

    @pl.when(t == pl.num_programs(1) - 1)
    def _():
        mean = jnp.sum(acc_ref[...], axis=1, keepdims=True) * inv_hw   # (C, 1)
        y = jnp.dot(w_ref[...], mean,
                    preferred_element_type=jnp.float32) + b_ref[...]
        att_ref[0] = _stable_sigmoid(y)


# --------------------------------------------------------------------------
# Fallback pass 2: channel-wise re-weighting out = x * att (native dtype).
# --------------------------------------------------------------------------
def arm_mul_kernel(x_ref, att_ref, o_ref):
    att = att_ref[0].astype(o_ref.dtype)                   # (C, 1)
    o_ref[0] = x_ref[0] * att


def _tpu_vmem_capacity_bytes():
    try:
        return int(getattr(pltpu.get_tpu_info(), "vmem_capacity_bytes",
                           64 * 1024 * 1024))
    except Exception:
        return 64 * 1024 * 1024   # conservative (v7x-sized) default


def _pick_tile_hw(hw, c, dtype_bytes, target_block_bytes, requested=None):
    """Multiple of 128 dividing HW with block bytes near the per-gen target."""
    if requested is not None:
        assert hw % requested == 0 and requested % 128 == 0, \
            "tile_hw must divide H*W and be a multiple of 128"
        return requested
    t = target_block_bytes // max(1, c * dtype_bytes)
    t = min(t, 128 * _MAX_FOLD_COLS, hw)
    t = max(128, t - (t % 128))
    while hw % t != 0:
        t -= 128
    return t


def attention_refinement_module(x, conv_w, conv_b, bn_gamma, bn_beta,
                                bn_mean, bn_var, eps=1e-5, tile_hw=None,
                                force_two_pass=False):
    """x: (N, C_in, H, W); conv_w: (C_out, C_in, 1, 1); returns (N, C_out, H, W)."""
    N, C_in, H, W = x.shape
    C_out = conv_w.shape[0]
    assert C_out == C_in, "torch.mul(input, x) requires out_channels == in_channels"
    HW = H * W
    x2 = x.reshape(N, C_in, HW)
    dtype_bytes = jnp.dtype(x.dtype).itemsize

    # Fold conv bias + eval-mode BN into the weight on the host.
    scale = (bn_gamma.astype(jnp.float32) /
             jnp.sqrt(bn_var.astype(jnp.float32) + eps))               # (C_out,)
    w_fold = conv_w.reshape(C_out, C_in).astype(jnp.float32) * scale[:, None]
    b_fold = (scale * conv_b.astype(jnp.float32)
              + bn_beta.astype(jnp.float32)
              - bn_mean.astype(jnp.float32) * scale).reshape(C_out, 1)

    # Per-generation VMEM budgets (v7x: 64 MiB physical; v5e/v6e: 128 MiB).
    vmem_cap = _tpu_vmem_capacity_bytes()
    small_vmem = vmem_cap <= 64 * 1024 * 1024
    vmem_limit = (48 if small_vmem else 100) * 1024 * 1024
    target_block_bytes = (4 if small_vmem else 8) * 1024 * 1024

    # Fused-path VMEM estimate: 2x double-buffered input slab + 2x output slab
    # + f32 temporaries for the pooled reduction + headroom.
    slab_bytes = C_in * HW * dtype_bytes
    fused_vmem_est = 4 * slab_bytes + 2 * C_in * HW * 4 + (2 << 20)
    use_fused = (not force_two_pass) and (
        HW % 128 != 0 or fused_vmem_est <= vmem_limit)
    # TODO(synk): images whose H*W is not a multiple of 128 AND whose slab does
    #             not fit VMEM are not tiled; they take the fused path as-is.

    inv_hw = float(1.0 / HW)

    if use_fused:
        out = pl.pallas_call(
            functools.partial(arm_fused_kernel, inv_hw),
            out_shape=jax.ShapeDtypeStruct((N, C_in, HW), x.dtype),
            grid_spec=pltpu.PrefetchScalarGridSpec(
                num_scalar_prefetch=0,
                grid=(N,),
                in_specs=[
                    pl.BlockSpec((1, C_in, HW), lambda n: (n, 0, 0)),   # x slab
                    pl.BlockSpec((C_out, C_in), lambda n: (0, 0)),      # folded W
                    pl.BlockSpec((C_out, 1), lambda n: (0, 0)),         # folded b
                ],
                out_specs=pl.BlockSpec((1, C_in, HW), lambda n: (n, 0, 0)),
            ),
            compiler_params=pltpu.CompilerParams(
                dimension_semantics=("parallel",),
                vmem_limit_bytes=vmem_limit),
        )(x2, w_fold, b_fold)
        return out.reshape(N, C_out, H, W)

    # ---- Fallback: two streaming passes (slab too big for VMEM) -----------
    t_hw = _pick_tile_hw(HW, C_in, dtype_bytes, target_block_bytes, tile_hw)
    n_tiles = HW // t_hw

    att = pl.pallas_call(
        functools.partial(arm_att_kernel, inv_hw),
        out_shape=jax.ShapeDtypeStruct((N, C_out, 1), jnp.float32),
        grid_spec=pltpu.PrefetchScalarGridSpec(
            num_scalar_prefetch=0,
            grid=(N, n_tiles),
            in_specs=[
                pl.BlockSpec((1, C_in, t_hw), lambda n, t: (n, 0, t)),  # x tile
                pl.BlockSpec((C_out, C_in), lambda n, t: (0, 0)),       # folded W
                pl.BlockSpec((C_out, 1), lambda n, t: (0, 0)),          # folded b
            ],
            out_specs=pl.BlockSpec((1, C_out, 1), lambda n, t: (n, 0, 0)),
            scratch_shapes=[pltpu.VMEM((C_out, 128), jnp.float32)],
        ),
        compiler_params=pltpu.CompilerParams(
            dimension_semantics=("parallel", "arbitrary"),
            vmem_limit_bytes=vmem_limit),
    )(x2, w_fold, b_fold)

    # Pass 2: (N outer, HW tiles inner) so the tiny att block index stays
    # constant across the inner axis and is DMA'd once per image.
    out = pl.pallas_call(
        arm_mul_kernel,
        out_shape=jax.ShapeDtypeStruct((N, C_in, HW), x.dtype),
        grid_spec=pltpu.PrefetchScalarGridSpec(
            num_scalar_prefetch=0,
            grid=(N, n_tiles),
            in_specs=[
                pl.BlockSpec((1, C_in, t_hw), lambda n, t: (n, 0, t)),  # x tile
                pl.BlockSpec((1, C_out, 1), lambda n, t: (n, 0, 0)),    # att
            ],
            out_specs=pl.BlockSpec((1, C_in, t_hw), lambda n, t: (n, 0, t)),
        ),
        compiler_params=pltpu.CompilerParams(
            dimension_semantics=("parallel", "parallel"),
            vmem_limit_bytes=vmem_limit),
    )(x2, att)

    return out.reshape(N, C_out, H, W)


# --------------------------------------------------------------------------
# Pure-JAX reference (eval-mode BatchNorm), for correctness checking.
# --------------------------------------------------------------------------
def _reference(x, conv_w, conv_b, bn_gamma, bn_beta, bn_mean, bn_var, eps=1e-5):
    N, C, H, W = x.shape
    Co = conv_w.shape[0]
    pooled = jnp.mean(x, axis=(2, 3), keepdims=True)                    # (N,C,1,1)
    conv = jnp.einsum('oc,ncij->noij', conv_w.reshape(Co, C), pooled)
    conv = conv + conv_b.reshape(1, Co, 1, 1)
    bn = (conv - bn_mean.reshape(1, Co, 1, 1)) / jnp.sqrt(
        bn_var.reshape(1, Co, 1, 1) + eps)
    bn = bn * bn_gamma.reshape(1, Co, 1, 1) + bn_beta.reshape(1, Co, 1, 1)
    att = jax.nn.sigmoid(bn)
    return x * att


if __name__ == "__main__":
    # Small shapes consistent with the module: batch=2, channels=8, spatial=16x16.
    N, C, H, W = 2, 8, 16, 16

    key = jax.random.PRNGKey(0)
    kx, kw, kb, kg, kbe, km, kv = jax.random.split(key, 7)

    x = jax.random.normal(kx, (N, C, H, W), dtype=jnp.float32)
    conv_w = jax.random.normal(kw, (C, C, 1, 1), dtype=jnp.float32) * 0.3
    conv_b = jax.random.normal(kb, (C,), dtype=jnp.float32) * 0.1
    bn_gamma = 1.0 + 0.1 * jax.random.normal(kg, (C,), dtype=jnp.float32)
    bn_beta = 0.1 * jax.random.normal(kbe, (C,), dtype=jnp.float32)
    bn_mean = 0.1 * jax.random.normal(km, (C,), dtype=jnp.float32)
    bn_var = 1.0 + 0.1 * jnp.abs(jax.random.normal(kv, (C,), dtype=jnp.float32))

    ref = _reference(x, conv_w, conv_b, bn_gamma, bn_beta, bn_mean, bn_var)

    # Preferred fused single-pass path (slab easily fits VMEM at these shapes).
    out = attention_refinement_module(x, conv_w, conv_b, bn_gamma, bn_beta,
                                      bn_mean, bn_var)
    out = jax.block_until_ready(out)
    assert out.shape == (N, C, H, W)
    assert jnp.allclose(out, ref, atol=1e-5, rtol=1e-5), "fused path mismatch"

    # Two-pass fallback path, exercised explicitly (tile_hw=128 -> 2 HW tiles:
    # covers the (C,128) accumulator init/accumulate/finalize and the tiled
    # broadcast-multiply).
    out2 = attention_refinement_module(x, conv_w, conv_b, bn_gamma, bn_beta,
                                       bn_mean, bn_var, tile_hw=128,
                                       force_two_pass=True)
    out2 = jax.block_until_ready(out2)
    assert out2.shape == (N, C, H, W)
    assert jnp.allclose(out2, ref, atol=1e-5, rtol=1e-5), "fallback path mismatch"

    print("KERNEL_OK")
</pallas_src>

<mosaic_0001>
module attributes {stable_mosaic.version = 11 : i64} {
  func.func @arm_fused_kernel(%arg0: i32, %arg1: memref<1x8x256xf32, #tpu.memory_space<vmem>>, %arg2: memref<8x8xf32, #tpu.memory_space<vmem>>, %arg3: memref<8x1xf32, #tpu.memory_space<vmem>>, %arg4: memref<1x8x256xf32, #tpu.memory_space<vmem>>) attributes {dimension_semantics = [#tpu.dimension_semantics<parallel>], iteration_bounds = array<i64: 2>, scalar_prefetch = 0 : i64, scratch_operands = 0 : i64, tpu.core_type = #tpu.core_type<tc>, window_params = [{transform_indices = @transform_0, window_bounds = array<i64: 1, 8, 256>}, {pipeline_mode = #tpu.pipeline_mode<synchronous>, transform_indices = @transform_1, window_bounds = array<i64: 8, 8>}, {pipeline_mode = #tpu.pipeline_mode<synchronous>, transform_indices = @transform_2, window_bounds = array<i64: 8, 1>}, {transform_indices = @transform_3, window_bounds = array<i64: 1, 8, 256>}]} {
    %c0 = arith.constant 0 : index
    %c0_0 = arith.constant 0 : index
    %c0_1 = arith.constant 0 : index
    %0 = vector.load %arg1[%c0, %c0_0, %c0_1] : memref<1x8x256xf32, #tpu.memory_space<vmem>>, vector<1x8x256xf32>
    %1 = vector.shape_cast %0 : vector<1x8x256xf32> to vector<8x256xf32>
    %2 = vector.extract_strided_slice %1 {offsets = [0, 0], sizes = [8, 128], strides = [1, 1]} : vector<8x256xf32> to vector<8x128xf32>
    %3 = vector.extract_strided_slice %1 {offsets = [0, 128], sizes = [8, 128], strides = [1, 1]} : vector<8x256xf32> to vector<8x128xf32>
    %4 = arith.addf %2, %3 : vector<8x128xf32>
    %cst = arith.constant dense<0.000000e+00> : vector<8xf32>
    %5 = vector.multi_reduction <add>, %4, %cst [1] : vector<8x128xf32> to vector<8xf32>
    %6 = vector.shape_cast %5 : vector<8xf32> to vector<8x1xf32>
    %cst_2 = arith.constant 3.906250e-03 : f32
    %7 = vector.broadcast %cst_2 : f32 to vector<8x1xf32>
    %8 = arith.mulf %6, %7 : vector<8x1xf32>
    %c0_3 = arith.constant 0 : index
    %c0_4 = arith.constant 0 : index
    %9 = vector.load %arg2[%c0_3, %c0_4] : memref<8x8xf32, #tpu.memory_space<vmem>>, vector<8x8xf32>
    %cst_5 = arith.constant dense<0.000000e+00> : vector<8x1xf32>
    %10 = tpu.matmul %9, %8, %cst_5 {dimension_numbers = #tpu.dot_dimension_numbers<[1], [0], [0], [1], [0, 0, 1, 1], [], []>} : vector<8x8xf32>, vector<8x1xf32>, vector<8x1xf32> -> vector<8x1xf32>
    %c0_6 = arith.constant 0 : index
    %c0_7 = arith.constant 0 : index
    %11 = vector.load %arg3[%c0_6, %c0_7] : memref<8x1xf32, #tpu.memory_space<vmem>>, vector<8x1xf32>
    %12 = arith.addf %10, %11 : vector<8x1xf32>
    %cst_8 = arith.constant 0.000000e+00 : f32
    %13 = vector.broadcast %cst_8 : f32 to vector<8x1xf32>
    %14 = arith.cmpf oge, %12, %13 : vector<8x1xf32>
    %cst_9 = arith.constant 0.000000e+00 : f32
    %15 = vector.broadcast %cst_9 : f32 to vector<8x1xf32>
    %16 = arith.subf %15, %12 : vector<8x1xf32>
    %17 = arith.select %14, %16, %12 : vector<8x1xi1>, vector<8x1xf32>
    %18 = math.exp %17 : vector<8x1xf32>
    %cst_10 = arith.constant 1.000000e+00 : f32
    %19 = vector.broadcast %cst_10 : f32 to vector<8x1xf32>
    %20 = arith.addf %19, %18 : vector<8x1xf32>
    %cst_11 = arith.constant 1.000000e+00 : f32
    %21 = vector.broadcast %cst_11 : f32 to vector<8x1xf32>
    %22 = arith.divf %21, %20 : vector<8x1xf32>
    %23 = arith.mulf %18, %22 : vector<8x1xf32>
    %24 = arith.select %14, %22, %23 : vector<8x1xi1>, vector<8x1xf32>
    %c0_12 = arith.constant 0 : index
    %c0_13 = arith.constant 0 : index
    %c0_14 = arith.constant 0 : index
    %25 = vector.load %arg1[%c0_12, %c0_13, %c0_14] : memref<1x8x256xf32, #tpu.memory_space<vmem>>, vector<1x8x256xf32>
    %26 = vector.shape_cast %25 : vector<1x8x256xf32> to vector<8x256xf32>
    %27 = vector.broadcast %24 : vector<8x1xf32> to vector<8x256xf32>
    %28 = arith.mulf %26, %27 : vector<8x256xf32>
    %c0_15 = arith.constant 0 : index
    %c0_16 = arith.constant 0 : index
    %c0_17 = arith.constant 0 : index
    %29 = vector.load %arg4[%c0_15, %c0_16, %c0_17] : memref<1x8x256xf32, #tpu.memory_space<vmem>>, vector<1x8x256xf32>
    %30 = vector.shape_cast %29 : vector<1x8x256xf32> to vector<8x256xf32>
    %31 = vector.shape_cast %28 : vector<8x256xf32> to vector<1x8x256xf32>
    tpu.vector_store %arg4[%c0_15, %c0_16, %c0_17], %31 {strides = array<i32>} : memref<1x8x256xf32, #tpu.memory_space<vmem>>, vector<1x8x256xf32>,
    return
  }
  func.func @transform_0(%arg0: i32) -> (i32, i32, i32) {
    %c0_i32 = arith.constant 0 : i32
    %c0_i32_0 = arith.constant 0 : i32
    %c0_i32_1 = arith.constant 0 : i32
    return %arg0, %c0_i32, %c0_i32_0 : i32, i32, i32
  }
  func.func @transform_1(%arg0: i32) -> (i32, i32) {
    %c0_i32 = arith.constant 0 : i32
    %c0_i32_0 = arith.constant 0 : i32
    %c0_i32_1 = arith.constant 0 : i32
    return %c0_i32, %c0_i32_0 : i32, i32
  }
  func.func @transform_2(%arg0: i32) -> (i32, i32) {
    %c0_i32 = arith.constant 0 : i32
    %c0_i32_0 = arith.constant 0 : i32
    %c0_i32_1 = arith.constant 0 : i32
    return %c0_i32, %c0_i32_0 : i32, i32
  }
  func.func @transform_3(%arg0: i32) -> (i32, i32, i32) {
    %c0_i32 = arith.constant 0 : i32
    %c0_i32_0 = arith.constant 0 : i32
    %c0_i32_1 = arith.constant 0 : i32
    return %arg0, %c0_i32, %c0_i32_0 : i32, i32, i32
  }
}

</mosaic_0001>

<bundles_post_ra>
// kernel: tpu_custom_call.1
= control target key start
LH: loop header
LB: loop body
LE: loop exit
PB: predicated region body
PF: predicated region fallthrough
CT: control target
= control target key end

     0   :  { %8 = vsyncpa [#allocation3], 0  ;;  %s745_s0 = inlined_call_operand.hbm [shape: f32[2,8,256], index: 0, kind: input, shape index: {}]   ;;  %s746_s1 = inlined_call_operand.vmem [shape: f32[8,8], index: 1, kind: input, shape index: {}]   ;;  %s747_s2 = inlined_call_operand.vmem [shape: f32[8,1], index: 2, kind: input, shape index: {}]   ;;  %s748_s3 = inlined_call_operand.hbm [shape: f32[2,8,256], index: 3, kind: output, shape index: {}]  }
   0x1   :  { %10 = vsyncpa [#allocation3 + $0x1], 0 }
   0x2   :  { %11 = vsyncpa [#allocation4], 0 }
   0x3   :  { %13 = vsyncpa [#allocation4 + $0x1], 0  ;;  %s574_s12 = smov 0   ;;  %s576_s13 = smov 0  }
   0x4   :  { %s578_s14 = smov 0   ;;  %s580_s15 = smov 0  }
   0x5 LB: > { %s595_s16 = sadd.s32 4294967295, %s547_s15   ;;  %s373_s17 = sadd.s32 4294967294, %s547_s15   ;;  %s547_s15 = sphi %s580_s15, %s763_s15   ;;  %s543_s14 = sphi %s578_s14, %s762_s14   ;;  %s539_s13 = sphi %s576_s13, %s761_s13   ;;  %s535_s12 = sphi %s574_s12, %s760_s12  }
   0x6   : > { %s599_s18 = sadd.s32 1, %s547_s15   ;;  %s26_s19 = sadd.s32 1, %s543_s14 }
   0x7   : > { %s23_s20 = ssub.s32 %s547_s15, %s599_s18  ;;  %p33_p0 = scmp.ne.s32.totalorder %s543_s14, %s539_s13 }
   0x8   : > { %p24_p1 = scmp.eq.s32.totalorder %s23_s20, 0  ;;  %p34_p2 = scmp.eq.s32.totalorder %s547_s15, 0 }
   0x9   : > { %p39_p3 = scmp.ne.s32.totalorder %s539_s13, %s535_s12  ;;  %p40_p4 = scmp.eq.s32.totalorder %s595_s16, 0 }
   0xa   : > { %s611_s21 = scalar_select %p24_p1, %s543_s14, %s26_s19  }
   0xb   : > { %p613_p5 = por %p34_p2, %p33_p0  ;;  %p617_p6 = por %p40_p4, %p39_p3 }
   0xc   : > { %p105_p7 = scmp.eq.s32.totalorder %s595_s16, 1  ;;  %p111_p8 = scmp.eq.s32.totalorder %s373_s17, 1 }
   0xd   : > { %p409_p10 = scmp.lt.s32.totalorder %s547_s15, 2  ;;  %s137_s26 = sand.u32 1, %s543_s14  }
   0xe   : > { %p624_p11 = por %p105_p7, %p33_p0  ;;  %p628_p12 = por %p111_p8, %p39_p3 }
   0xf   : > { %s388_s27 = sshll.u32 %s547_s15, 8  ;;  %s376_s28 = sshll.u32 %s137_s26, 4 }
  0x10   : > { %s752_s24 = scalar_select %p624_p11, 1, 0 }
  0x11   : > { %s753_s25 = scalar_select %p628_p12, 1, 0 }
  0x12   : > { %s637_s4 = scalar_lea.hbm %s745_s0, %s388_s27  ;;  %s141_s5 = scalar_lea.vmem [#allocation2], %s376_s28 }
  0x13   : > { %s149_s6 = sshll.u32 %s141_s5, 4  ;;  %p641_p13 = pnand %p409_p10, %p613_p5  ;;  %s645_s6 = int_to_ptr.vmem [resolvable:$true] %s149_s6 }
  0x14   : > { %s138_s8 = scalar_lea.sflag [#allocation3], %s137_s26  ;;  %s451_s9 = scalar_lea.hbm %s637_s4, 256 }
  0x15   : > { %p452_p2 = scmp.ne.s32.totalorder %s637_s4, %s451_s9  ;;  %p453_p3 = pneg %p641_p13 }
  0x16   : > { %s456_s17 = scalar_lea.hbm %s745_s0, 512  ;;  %p457_p5 = scmp.lt.u32.totalorder %s637_s4, %s745_s0 }
  0x17   : > { %p454_p4 = pnand %p453_p3, %p452_p2  ;;  %p458_p8 = scmp.lt.u32.totalorder %s456_s17, %s451_s9 }
  0x18   : > { %p460_p9 = scmp.lt.u32.totalorder %s451_s9, %s637_s4 }
  0x19   : > { %p455_p7 = pneg %p454_p4  ;;  %p459_p10 = por %p458_p8, %p457_p5 }
  0x1b   : > { %p461_p0 = por %p460_p9, %p459_p10 }
  0x1d   : > { %p462_p1 = pnand %p461_p0, %p455_p7 }
  0x1f   : > { %465 = shalt.err (!%p462_p1)
}
  0x20   : > { %s466_s22 = scalar_lea.vmem %s645_s6, 256  ;;  %s549_s26 = smov [#allocation2]  }
  0x21   : > { %p467_p2 = scmp.ne.s32.totalorder %s645_s6, %s466_s22  ;;  %s471_s27 = sshll.u32 %s549_s26, 4  ;;  %s472_s27 = int_to_ptr.vmem [resolvable:$false] %s471_s27 }
  0x22   : > { %s473_s28 = scalar_lea.vmem %s472_s27, 512  ;;  %p474_p11 = scmp.lt.s32.totalorder %s645_s6, %s472_s27 }
  0x23   : > { %p469_p4 = pnand %p467_p2, %p453_p3  ;;  %p475_p5 = scmp.lt.s32.totalorder %s473_s28, %s466_s22 }
  0x25   : > { %p470_p12 = pneg %p469_p4  ;;  %p476_p8 = por %p475_p5, %p474_p11 }
  0x27   : > { %p477_p9 = pnand %p476_p8, %p470_p12 }
  0x29   : > { %480 = shalt.err (!%p477_p9)
}
  0x2a   : > { %404 = dma.hbm_to_vmem [thread:$0]  (!%p641_p13), %s637_s4, 256, %s645_s6, %s138_s8  }
  0x2b   : > { %p755_p0 = scmp.lt.s32.totalorder %s547_s15, 3  ;;  %p756_p1 = scmp.ge.s32.totalorder %s547_s15, 1 }
  0x2d   : > { %p155_p3 = pnand %p756_p1, %p755_p0 }
  0x2e   : > { %s679_s29 = sand.u32 (!%p155_p3), 1, %s539_s13  }
  0x2f   : > { %158 = sbr.rel (%p155_p3) target bundleno = 593 (0x251), region = 32  ;;  %s380_s30 = sshll.u32 (!%p155_p3), %s679_s29, 4 }
  0x30   : > { %s161_s5 = scalar_lea.sflag (!%p155_p3), [#allocation3], %s679_s29  ;;  %s164_s7 = scalar_lea.vmem (!%p155_p3), [#allocation2], %s380_s30 }
  0x36   : > { %526 = dma.done.wait (%p617_p6), %s161_s5, 256  }
  0x37   : > { %528 = vsyncadd (%p617_p6), %s161_s5, 4294967040  ;;  %v187_v0 = vld [vmem:[%s164_s7] sm:$0xff]  ;;  %v188_v1 = vld [vmem:[%s164_s7 + $0x8] sm:$0xff]  ;;  %v550_v3 = vmov 0.0   ;;  %vm551_vm0 = vmmov 0   ;;  %vm195_vm1 = vcmask 64512  }
  0x38   : > { %v189_v2 = vadd.f32 %v188_v1, %v187_v0  ;;  %392 = vmatprep.subr.mxu0 %v550_v3  ;;  %394 = vmatprep.mubr.msk.f32.mxu0 %vm551_vm0, %v550_v3  ;;  %v193_v6 = vld [vmem:[%s746_s1] sm:$0xff]  ;;  %v552_v7 = vmov 0   ;;  %s389_s9 = sshll.u32 %s595_s16, 8  ;;  %s186_s10 = scalar_lea.vmem [#allocation5], %s380_s30 }
  0x39   : > { %446 = vset.pattern.permute.xlu0 %v552_v7  ;;  %v194_v8 = vld [vmem:[%s747_s2] sm:$0xff]  ;;  %s303_s11 = sshll.u32 %s186_s10, 4  ;;  %s701_s20 = scalar_lea.hbm %s748_s3, %s389_s9  ;;  %s703_s11 = int_to_ptr.vmem [resolvable:$true] %s303_s11 }
  0x3a   : > { %190 = vadd.xlane.f32.xlu0 %v189_v2  ;;  %s289_s22 = scalar_lea.sflag [#allocation4], %s679_s29  ;;  %s481_s16 = scalar_lea.vmem %s703_s11, 256 }
  0x3b   : > { %p482_p6 = scmp.ne.s32.totalorder %s703_s11, %s481_s16  ;;  %p757_p11 = scmp.ne.s32.totalorder %s752_s24, 0 }
  0x3c   : > { %s553_s26 = smov [#allocation5]  }
  0x3d   : > { %p483_p12 = pnand %p482_p6, %p757_p11  ;;  %s485_s27 = sshll.u32 %s553_s26, 4  ;;  %s486_s27 = int_to_ptr.vmem [resolvable:$false] %s485_s27 }
  0x3e   : > { %s487_s28 = scalar_lea.vmem %s486_s27, 512  ;;  %p488_p7 = scmp.lt.s32.totalorder %s703_s11, %s486_s27 }
  0x3f   : > { %p484_p13 = pneg %p483_p12  ;;  %p489_p10 = scmp.lt.s32.totalorder %s487_s28, %s481_s16 }
  0x41   : > { %p490_p2 = por %p489_p10, %p488_p7 }
  0x43   : > { %p491_p4 = pnand %p490_p2, %p484_p13 }
  0xc7   : > { %v191_v4 = vpop.xlane.xlu0 %190 }
  0xc8   : > { %v192_v5 = vmul.f32 0.00390625, %v191_v4 }
  0xca   : > { %393 = vmatpush3.msra.mxu0 %v192_v5 }
  0xcb   : > { %395 = vmatmul.mubr.msk.f32.vlgmr.msra.gmra.mrb[0].mxu0 %vm195_vm1, %v193_v6 }
 0x19e   : > { %v265_v9 = vpop.f32.mrb[0].mxu0 }
 0x19f   : > { %v266_v10 = vadd.f32 %v265_v9, %v194_v8  ;;  %v396_v11 = vpop.f32.mrb[1].mxu0 }
 0x1a1   : > { %v270_v12 = vsub.f32 0.0, %v266_v10  ;;  %vm269_vm2 = vcmp.ge.f32.partialorder %v266_v10, 0.0 }
 0x1a3   : > { %v271_v13 = vsel %vm269_vm2, %v270_v12, %v266_v10 }
 0x1a4   : > { %v272_v14 = vmul.f32 1.442695, %v271_v13 }
 0x1a6   : > { %447 = vpow2.f32 %v272_v14 }
 0x1b0   : > { %v448_v15 = vpop.eup %447 }
 0x1b1   : > { %v274_v16 = vadd.f32 1.0, %v448_v15 }
 0x1b3   : > { %449 = vrcp.f32 %v274_v16 }
 0x1bd   : > { %v450_v17 = vpop.eup %449 }
 0x1be   : > { %v277_v18 = vmul.f32 %v450_v17, %v448_v15 }
 0x1c0   : > { %v278_v19 = vsel %vm269_vm2, %v450_v17, %v277_v18 }
 0x1c1   : > { %281 = vperm.xlu0 %446, %v278_v19  }
 0x240   : > { %v282_v20 = vpop.permute.xlu0 %281 }
 0x241   : > { %v284_v21 = vmul.f32 %v282_v20, %v187_v0  ;;  %v285_v22 = vmul.f32 %v282_v20, %v188_v1 }
 0x243   : > { %286 = vst [vmem:[%s186_s10] sm:$0xff] %v284_v21  ;;  %287 = vst [vmem:[%s186_s10 + $0x8] sm:$0xff] %v285_v22 }
 0x244   : > { %494 = shalt.err (!%p491_p4)
}
 0x245   : > { %s495_s29 = scalar_lea.hbm %s701_s20, 256  ;;  %s499_s7 = scalar_lea.hbm %s748_s3, 512 }
 0x246   : > { %p496_p5 = scmp.ne.s32.totalorder %s701_s20, %s495_s29  ;;  %p500_p0 = scmp.lt.u32.totalorder %s701_s20, %s748_s3 }
 0x247   : > { %p501_p1 = scmp.lt.u32.totalorder %s499_s7, %s495_s29  ;;  %p503_p6 = scmp.lt.u32.totalorder %s495_s29, %s701_s20 }
 0x248   : > { %p497_p8 = pnand %p496_p5, %p757_p11 }
 0x249   : > { %p502_p3 = por %p501_p1, %p500_p0 }
 0x24a   : > { %p498_p9 = pneg %p497_p8 }
 0x24b   : > { %p504_p12 = por %p503_p6, %p502_p3 }
 0x24d   : > { %p505_p13 = pnand %p504_p12, %p498_p9 }
 0x24f   : > { %508 = shalt.err (!%p505_p13)
}
 0x250   : > { %399 = dma.vmem_to_hbm [thread:$0]  (%p757_p11), %s703_s11, 256, %s701_s20, %s289_s22  }
 0x251 PF: > { %s315_s23 = sand.u32 1, %s535_s12   ;;  %p758_p7 = scmp.ne.s32.totalorder %s753_s25, 0 }
 0x252   : > { %p759_p10 = scmp.ge.s32.totalorder %s547_s15, 2  ;;  %s316_s8 = scalar_lea.sflag [#allocation4], %s315_s23 }
 0x254   : > { %p406_p2 = pnand %p759_p10, %p758_p7 }
 0x256   : > { %530 = dma.done.wait (!%p406_p2), %s316_s8, 256  }
 0x257   : > { %532 = vsyncadd (!%p406_p2), %s316_s8, 4294967040  ;;  %p16_p4 = scmp.ge.s32.totalorder %s599_s18, 4   ;;  %s760_s12 = smov %s539_s13 }
 0x258   : > { %s761_s13 = smov %s543_s14  ;;  %s762_s14 = smov %s611_s21 }
 0x259   : > { %s763_s15 = smov %s599_s18  ;;  %18 = sbr.rel (!%p16_p4) target bundleno = 5 (0x5), region = 77 }
 0x260   :  { %321 = vsyncpa [#allocation3], 1 }
 0x261   :  { %323 = vsyncpa [#allocation3 + $0x1], 1 }
 0x262   :  { %324 = vsyncpa [#allocation4], 1 }
 0x263   :  { %326 = vsyncpa [#allocation4 + $0x1], 1 }

</bundles_post_ra>
